<compile_context>
chip_gen: v5e
topology: v5e:2x2
jax: 0.10.0
libtpu: 0.0.40
codegen_flags: <defaults>
</compile_context>

<pallas_src>
import math

import jax
import jax.numpy as jnp
from jax.experimental import pallas as pl
from jax.experimental.pallas import tpu as pltpu


# Padded-vocab bias fill. Representable in f32 and bf16 (8-bit exponent), and
# exp(fill - row_max) underflows to 0, so padded columns never affect the LSE.
_NEG_FILL = -1e30


def _round_up(a, b):
    return -(-a // b) * b


def _sublane_multiple(dtype):
    # Minimum second-to-last tile dim: 8 (4-byte), 16 (2-byte), 32 (1-byte).
    return max(8, 32 // jnp.dtype(dtype).itemsize)


def _vmem_capacity_bytes():
    try:
        return int(pltpu.get_tpu_info().vmem_capacity_bytes)
    except Exception:
        return 64 << 20  # conservative fallback (v7x per-TC VMEM)


# ---------------- pass 1: logits tiles + online log-sum-exp ----------------

def _logits_lse_kernel(x_ref, w_ref, b_ref, logits_ref, lse_ref, m_sc, l_sc):
    # x_ref:      (tm, d_model_p)  resident across the vocab axis
    # w_ref:      (d_model_p, tn)  streamed weight tile
    # b_ref:      (1, tn)          bias tile
    # logits_ref: (tm, tn) f32     per-(i, j) raw-logits output tile
    # lse_ref:    (tm, 1)  f32     per-row log-sum-exp (written at last j)
    # m_sc, l_sc: (tm, 1)  f32     running max / running sum-exp scratches
    j = pl.program_id(1)
    nj = pl.num_programs(1)

    @pl.when(j == 0)
    def _init():
        m_sc[...] = jnp.full_like(m_sc, -jnp.inf)
        l_sc[...] = jnp.zeros_like(l_sc)

    logits = jnp.dot(x_ref[...], w_ref[...],
                     preferred_element_type=jnp.float32)
    logits = logits + b_ref[...].astype(jnp.float32)
    logits_ref[...] = logits

    m_prev = m_sc[...]
    m_new = jnp.maximum(m_prev, jnp.max(logits, axis=-1, keepdims=True))
    alpha = jnp.exp(m_prev - m_new)
    l_sc[...] = alpha * l_sc[...] + jnp.sum(jnp.exp(logits - m_new),
                                            axis=-1, keepdims=True)
    m_sc[...] = m_new

    @pl.when(j == nj - 1)
    def _emit_lse():
        lse_ref[...] = m_sc[...] + jnp.log(l_sc[...])


# ---------------- pass 2: cheap elementwise normalization ------------------

def _normalize_kernel(logits_ref, lse_ref, o_ref):
    o_ref[...] = (logits_ref[...] - lse_ref[...]).astype(o_ref.dtype)


# ------------------------------ wrapper -------------------------------------

def projection_layer(x, weight, bias, *, tm_max=256, tn_max=512,
                     out_dtype=None):
    """log_softmax(x @ weight + bias, axis=-1).

    x: (batch, seq, d_model); weight: (d_model, vocab); bias: (vocab,).
    """
    batch, seq, d_model = x.shape
    d_model_w, vocab = weight.shape
    assert d_model_w == d_model
    out_dtype = jnp.dtype(out_dtype if out_dtype is not None else x.dtype)

    n_tokens = batch * seq
    x_it = jnp.dtype(x.dtype).itemsize
    w_it = jnp.dtype(weight.dtype).itemsize
    b_it = jnp.dtype(bias.dtype).itemsize
    out_it = out_dtype.itemsize

    sub = _sublane_multiple(x.dtype)
    d_model_p = _round_up(d_model, 128)

    tm = _round_up(min(tm_max, _round_up(n_tokens, sub)), sub)
    tn = _round_up(min(tn_max, _round_up(vocab, 128)), 128)

    budget = _vmem_capacity_bytes() - (8 << 20)

    def pass1_vmem(tm_, tn_):
        return (2 * tm_ * d_model_p * x_it      # resident x row block (dbl-buf)
                + 2 * d_model_p * tn_ * w_it    # streamed weight tiles
                + 2 * 8 * tn_ * b_it            # bias tiles (sublane-padded)
                + 2 * tm_ * tn_ * 4             # f32 logits output tiles
                + 4 * tm_ * 128 * 4)            # lse out + m/l scratch (lane-padded)

    # Size tiles from the budget (never silently cap below actual need).
    while pass1_vmem(tm, tn) > budget and (tn > 128 or tm > sub):
        if tn > 128:
            tn = max(128, tn // 2)
        else:
            tm = max(sub, tm // 2)
    if pass1_vmem(tm, tn) > budget:
        # TODO(synk): add a d_model (K-axis) streaming fallback for huge d_model.
        raise ValueError("d_model too large for a single-K weight tile in VMEM")

    n_tok_p = _round_up(n_tokens, tm)
    vocab_p = _round_up(vocab, tn)

    x2d = x.reshape(n_tokens, d_model)
    if (n_tok_p, d_model_p) != (n_tokens, d_model):
        x2d = jnp.pad(x2d, ((0, n_tok_p - n_tokens), (0, d_model_p - d_model)))
    w_p = weight
    if (d_model_p, vocab_p) != (d_model, vocab):
        w_p = jnp.pad(weight, ((0, d_model_p - d_model), (0, vocab_p - vocab)))
    b_p = bias
    if vocab_p != vocab:
        b_p = jnp.pad(bias, (0, vocab_p - vocab), constant_values=_NEG_FILL)
    b2d = b_p.reshape(1, vocab_p)

    grid = (n_tok_p // tm, vocab_p // tn)

    vmem1 = pass1_vmem(tm, tn)
    vmem_limit1 = min(max(max(vmem1 * 5 // 4, 32 << 20), vmem1), budget)

    logits, lse = pl.pallas_call(
        _logits_lse_kernel,
        out_shape=(jax.ShapeDtypeStruct((n_tok_p, vocab_p), jnp.float32),
                   jax.ShapeDtypeStruct((n_tok_p, 1), jnp.float32)),
        grid_spec=pltpu.PrefetchScalarGridSpec(
            num_scalar_prefetch=0,
            grid=grid,
            in_specs=[
                pl.BlockSpec((tm, d_model_p), lambda i, j: (i, 0)),   # x rows
                pl.BlockSpec((d_model_p, tn), lambda i, j: (0, j)),   # weights
                pl.BlockSpec((1, tn), lambda i, j: (0, j)),           # bias
            ],
            out_specs=[
                pl.BlockSpec((tm, tn), lambda i, j: (i, j)),          # logits
                pl.BlockSpec((tm, 1), lambda i, j: (i, 0)),           # lse
            ],
            scratch_shapes=[pltpu.VMEM((tm, 1), jnp.float32),
                            pltpu.VMEM((tm, 1), jnp.float32)],
        ),
        compiler_params=pltpu.CompilerParams(
            dimension_semantics=("parallel", "arbitrary"),
            vmem_limit_bytes=int(vmem_limit1),
        ),
    )(x2d, w_p, b2d)

    vmem2 = 2 * tm * tn * 4 + 2 * tm * 128 * 4 + 2 * tm * tn * out_it
    vmem_limit2 = min(max(vmem2 * 2, 32 << 20), budget)

    out2d = pl.pallas_call(
        _normalize_kernel,
        out_shape=jax.ShapeDtypeStruct((n_tok_p, vocab_p), out_dtype),
        grid_spec=pltpu.PrefetchScalarGridSpec(
            num_scalar_prefetch=0,
            grid=grid,
            in_specs=[
                pl.BlockSpec((tm, tn), lambda i, j: (i, j)),
                pl.BlockSpec((tm, 1), lambda i, j: (i, 0)),
            ],
            out_specs=pl.BlockSpec((tm, tn), lambda i, j: (i, j)),
        ),
        compiler_params=pltpu.CompilerParams(
            dimension_semantics=("parallel", "parallel"),
            vmem_limit_bytes=int(vmem_limit2),
        ),
    )(logits, lse)

    return out2d[:n_tokens, :vocab].reshape(batch, seq, vocab)


if __name__ == "__main__":
    # Small shapes consistent with the module: (batch, seq, d_model) -> vocab.
    batch, seq, d_model, vocab = 2, 8, 32, 128

    key = jax.random.PRNGKey(0)
    kx, kw, kb = jax.random.split(key, 3)

    x = jax.random.normal(kx, (batch, seq, d_model), dtype=jnp.float32)

    # Deterministic init matching nn.Linear default: U(-1/sqrt(in), 1/sqrt(in)).
    # PyTorch stores weight as (vocab, d_model); kernel uses (d_model, vocab).
    bound = 1.0 / math.sqrt(d_model)
    weight = jax.random.uniform(
        kw, (d_model, vocab), minval=-bound, maxval=bound, dtype=jnp.float32
    )
    bias = jax.random.uniform(
        kb, (vocab,), minval=-bound, maxval=bound, dtype=jnp.float32
    )

    out = projection_layer(x, weight, bias)
    jax.block_until_ready(out)

    ref = jax.nn.log_softmax(x @ weight + bias, axis=-1)
    assert out.shape == (batch, seq, vocab)
    assert jnp.allclose(out, ref, atol=1e-5, rtol=1e-5)

    # Also exercise padding on every axis (odd tokens, d_model, vocab) so the
    # multi-vocab-tile / online-LSE path and row/K/vocab padding are covered.
    b2, s2, d2, v2 = 3, 5, 48, 200
    x2 = jax.random.normal(kx, (b2, s2, d2), dtype=jnp.float32)
    w2 = jax.random.uniform(kw, (d2, v2), minval=-0.1, maxval=0.1,
                            dtype=jnp.float32)
    bb2 = jax.random.uniform(kb, (v2,), minval=-0.1, maxval=0.1,
                             dtype=jnp.float32)
    out2 = projection_layer(x2, w2, bb2, tn_max=128)   # force >1 vocab tile
    jax.block_until_ready(out2)
    ref2 = jax.nn.log_softmax(x2 @ w2 + bb2, axis=-1)
    assert out2.shape == (b2, s2, v2)
    assert jnp.allclose(out2, ref2, atol=1e-5, rtol=1e-5)

    print("KERNEL_OK")
</pallas_src>

<mosaic_0001>
module attributes {stable_mosaic.version = 11 : i64} {
  func.func @_logits_lse_kernel(%arg0: i32, %arg1: i32, %arg2: memref<16x128xf32, #tpu.memory_space<vmem>>, %arg3: memref<128x128xf32, #tpu.memory_space<vmem>>, %arg4: memref<1x128xf32, #tpu.memory_space<vmem>>, %arg5: memref<16x128xf32, #tpu.memory_space<vmem>>, %arg6: memref<16x1xf32, #tpu.memory_space<vmem>>, %arg7: memref<16x1xf32, #tpu.memory_space<vmem>>, %arg8: memref<16x1xf32, #tpu.memory_space<vmem>>) attributes {dimension_semantics = [#tpu.dimension_semantics<parallel>, #tpu.dimension_semantics<arbitrary>], iteration_bounds = array<i64: 1, 1>, scalar_prefetch = 0 : i64, scratch_operands = 2 : i64, tpu.core_type = #tpu.core_type<tc>, window_params = [{transform_indices = @transform_0, window_bounds = array<i64: 16, 128>}, {transform_indices = @transform_1, window_bounds = array<i64: 128, 128>}, {transform_indices = @transform_2, window_bounds = array<i64: 1, 128>}, {transform_indices = @transform_3, window_bounds = array<i64: 16, 128>}, {transform_indices = @transform_4, window_bounds = array<i64: 16, 1>}]} {
    %c0_i32 = arith.constant 0 : i32
    %0 = arith.cmpi eq, %arg1, %c0_i32 : i32
    %1 = arith.extui %0 : i1 to i32
    %c0_i32_0 = arith.constant 0 : i32
    %2 = arith.cmpi ne, %1, %c0_i32_0 : i32
    scf.if %2 {
      %cst_20 = arith.constant 0xFF800000 : f32
      %29 = vector.broadcast %cst_20 : f32 to vector<16x1xf32>
      %c0_21 = arith.constant 0 : index
      %c0_22 = arith.constant 0 : index
      %30 = vector.load %arg7[%c0_21, %c0_22] : memref<16x1xf32, #tpu.memory_space<vmem>>, vector<16x1xf32>
      tpu.vector_store %arg7[%c0_21, %c0_22], %29 {strides = array<i32>} : memref<16x1xf32, #tpu.memory_space<vmem>>, vector<16x1xf32>,
      %cst_23 = arith.constant 0.000000e+00 : f32
      %31 = vector.broadcast %cst_23 : f32 to vector<16x1xf32>
      %c0_24 = arith.constant 0 : index
      %c0_25 = arith.constant 0 : index
      %32 = vector.load %arg8[%c0_24, %c0_25] : memref<16x1xf32, #tpu.memory_space<vmem>>, vector<16x1xf32>
      tpu.vector_store %arg8[%c0_24, %c0_25], %31 {strides = array<i32>} : memref<16x1xf32, #tpu.memory_space<vmem>>, vector<16x1xf32>,
    } else {
    }
    %c0 = arith.constant 0 : index
    %c0_1 = arith.constant 0 : index
    %3 = vector.load %arg2[%c0, %c0_1] : memref<16x128xf32, #tpu.memory_space<vmem>>, vector<16x128xf32>
    %c0_2 = arith.constant 0 : index
    %c0_3 = arith.constant 0 : index
    %4 = vector.load %arg3[%c0_2, %c0_3] : memref<128x128xf32, #tpu.memory_space<vmem>>, vector<128x128xf32>
    %cst = arith.constant dense<0.000000e+00> : vector<16x128xf32>
    %5 = tpu.matmul %3, %4, %cst {dimension_numbers = #tpu.dot_dimension_numbers<[1], [0], [0], [1], [0, 0, 1, 1], [], []>} : vector<16x128xf32>, vector<128x128xf32>, vector<16x128xf32> -> vector<16x128xf32>
    %c0_4 = arith.constant 0 : index
    %c0_5 = arith.constant 0 : index
    %6 = vector.load %arg4[%c0_4, %c0_5] : memref<1x128xf32, #tpu.memory_space<vmem>>, vector<1x128xf32>
    %7 = vector.broadcast %6 : vector<1x128xf32> to vector<16x128xf32>
    %8 = arith.addf %5, %7 : vector<16x128xf32>
    %c0_6 = arith.constant 0 : index
    %c0_7 = arith.constant 0 : index
    %9 = vector.load %arg5[%c0_6, %c0_7] : memref<16x128xf32, #tpu.memory_space<vmem>>, vector<16x128xf32>
    tpu.vector_store %arg5[%c0_6, %c0_7], %8 {strides = array<i32>} : memref<16x128xf32, #tpu.memory_space<vmem>>, vector<16x128xf32>,
    %c0_8 = arith.constant 0 : index
    %c0_9 = arith.constant 0 : index
    %10 = vector.load %arg7[%c0_8, %c0_9] : memref<16x1xf32, #tpu.memory_space<vmem>>, vector<16x1xf32>
    %cst_10 = arith.constant dense<0xFF800000> : vector<16xf32>
    %11 = vector.multi_reduction <maximumf>, %8, %cst_10 [1] : vector<16x128xf32> to vector<16xf32>
    %12 = vector.shape_cast %11 : vector<16xf32> to vector<16x1xf32>
    %13 = arith.maximumf %10, %12 : vector<16x1xf32>
    %14 = arith.subf %10, %13 : vector<16x1xf32>
    %15 = math.exp %14 : vector<16x1xf32>
    %c0_11 = arith.constant 0 : index
    %c0_12 = arith.constant 0 : index
    %16 = vector.load %arg8[%c0_11, %c0_12] : memref<16x1xf32, #tpu.memory_space<vmem>>, vector<16x1xf32>
    %17 = arith.mulf %15, %16 : vector<16x1xf32>
    %18 = vector.broadcast %13 : vector<16x1xf32> to vector<16x128xf32>
    %19 = arith.subf %8, %18 : vector<16x128xf32>
    %20 = math.exp %19 : vector<16x128xf32>
    %cst_13 = arith.constant dense<0.000000e+00> : vector<16xf32>
    %21 = vector.multi_reduction <add>, %20, %cst_13 [1] : vector<16x128xf32> to vector<16xf32>
    %22 = vector.shape_cast %21 : vector<16xf32> to vector<16x1xf32>
    %23 = arith.addf %17, %22 : vector<16x1xf32>
    %c0_14 = arith.constant 0 : index
    %c0_15 = arith.constant 0 : index
    %24 = vector.load %arg8[%c0_14, %c0_15] : memref<16x1xf32, #tpu.memory_space<vmem>>, vector<16x1xf32>
    tpu.vector_store %arg8[%c0_14, %c0_15], %23 {strides = array<i32>} : memref<16x1xf32, #tpu.memory_space<vmem>>, vector<16x1xf32>,
    %c0_16 = arith.constant 0 : index
    %c0_17 = arith.constant 0 : index
    %25 = vector.load %arg7[%c0_16, %c0_17] : memref<16x1xf32, #tpu.memory_space<vmem>>, vector<16x1xf32>
    tpu.vector_store %arg7[%c0_16, %c0_17], %13 {strides = array<i32>} : memref<16x1xf32, #tpu.memory_space<vmem>>, vector<16x1xf32>,
    %c0_i32_18 = arith.constant 0 : i32
    %26 = arith.cmpi eq, %arg1, %c0_i32_18 : i32
    %27 = arith.extui %26 : i1 to i32
    %c0_i32_19 = arith.constant 0 : i32
    %28 = arith.cmpi ne, %27, %c0_i32_19 : i32
    scf.if %28 {
      %c0_20 = arith.constant 0 : index
      %c0_21 = arith.constant 0 : index
      %29 = vector.load %arg7[%c0_20, %c0_21] : memref<16x1xf32, #tpu.memory_space<vmem>>, vector<16x1xf32>
      %c0_22 = arith.constant 0 : index
      %c0_23 = arith.constant 0 : index
      %30 = vector.load %arg8[%c0_22, %c0_23] : memref<16x1xf32, #tpu.memory_space<vmem>>, vector<16x1xf32>
      %31 = math.log %30 : vector<16x1xf32>
      %32 = arith.addf %29, %31 : vector<16x1xf32>
      %c0_24 = arith.constant 0 : index
      %c0_25 = arith.constant 0 : index
      %33 = vector.load %arg6[%c0_24, %c0_25] : memref<16x1xf32, #tpu.memory_space<vmem>>, vector<16x1xf32>
      tpu.vector_store %arg6[%c0_24, %c0_25], %32 {strides = array<i32>} : memref<16x1xf32, #tpu.memory_space<vmem>>, vector<16x1xf32>,
    } else {
    }
    return
  }
  func.func @transform_0(%arg0: i32, %arg1: i32) -> (i32, i32) {
    %c0_i32 = arith.constant 0 : i32
    %c0_i32_0 = arith.constant 0 : i32
    return %arg0, %c0_i32 : i32, i32
  }
  func.func @transform_1(%arg0: i32, %arg1: i32) -> (i32, i32) {
    %c0_i32 = arith.constant 0 : i32
    %c0_i32_0 = arith.constant 0 : i32
    return %c0_i32, %arg1 : i32, i32
  }
  func.func @transform_2(%arg0: i32, %arg1: i32) -> (i32, i32) {
    %c0_i32 = arith.constant 0 : i32
    %c0_i32_0 = arith.constant 0 : i32
    return %c0_i32, %arg1 : i32, i32
  }
  func.func @transform_3(%arg0: i32, %arg1: i32) -> (i32, i32) {
    %c0_i32 = arith.constant 0 : i32
    return %arg0, %arg1 : i32, i32
  }
  func.func @transform_4(%arg0: i32, %arg1: i32) -> (i32, i32) {
    %c0_i32 = arith.constant 0 : i32
    %c0_i32_0 = arith.constant 0 : i32
    return %arg0, %c0_i32 : i32, i32
  }
}

</mosaic_0001>

<bundles_post_ra>
// kernel: tpu_custom_call.1
= control target key start
LH: loop header
LB: loop body
LE: loop exit
PB: predicated region body
PF: predicated region fallthrough
CT: control target
= control target key end

     0   :  { %10 = vsyncpa [#allocation5], 0  ;;  %s376_s0 = inlined_call_operand.hbm [shape: f32[16,128], index: 0, kind: input, shape index: {}]   ;;  %s377_s1 = inlined_call_operand.hbm [shape: f32[128,128], index: 1, kind: input, shape index: {}]   ;;  %s378_s2 = inlined_call_operand.vmem [shape: f32[1,128], index: 2, kind: input, shape index: {}]   ;;  %s379_s3 = inlined_call_operand.hbm [shape: f32[16,128], index: 3, kind: output, shape index: {0}]   ;;  %s380_s4 = inlined_call_operand.vmem [shape: f32[16,1], index: 4, kind: output, shape index: {1}]  }
   0x1   :  { %11 = vsyncpa [#allocation8], 0 }
   0x2   :  { %12 = vsyncpa [#allocation6], 0  ;;  %s17_s17 = sshll.u32 %s376_s0, 4  ;;  %s306_s18 = smov [#allocation4]   ;;  %s18_s17 = int_to_ptr.hbm [resolvable:$true] %s17_s17 }
   0x3   :  { %s19_s19 = sshll.u32 %s306_s18, 4  ;;  %s30_s22 = sshll.u32 %s377_s1, 4  ;;  %s20_s19 = int_to_ptr.vmem [resolvable:$true] %s19_s19  ;;  %s31_s22 = int_to_ptr.hbm [resolvable:$true] %s30_s22 }
   0x4   :  { %s307_s23 = smov 128   ;;  %s308_s24 = smov 8  }
   0x5   :  { %25 = dma.hbm_to_vmem [thread:$0]  %s18_s17, 256, %s20_s19, [#allocation5], %s307_s23, %s307_s23, %s308_s24  }
   0x6   :  { %s309_s25 = smov [#allocation7]  }
   0x7   :  { %s32_s26 = sshll.u32 %s309_s25, 4  ;;  %s33_s26 = int_to_ptr.vmem [resolvable:$true] %s32_s26 }
   0x8   :  { %38 = dma.hbm_to_vmem [thread:$0]  %s31_s22, 2048, %s33_s26, [#allocation8], %s307_s23, %s307_s23, %s308_s24  }
   0x9   :  { %300 = dma.done.wait [#allocation5], 256  }
   0xa   :  { %301 = vsyncadd [#allocation5], 4294967040 }
   0xb   :  { %302 = dma.done.wait [#allocation8], 2048  }
   0xc   :  { %303 = vsyncadd [#allocation8], 4294965248  ;;  %v75_v0 = vld [vmem:[#allocation7 + $0x78] sm:$0xff]  ;;  %v74_v1 = vld [vmem:[#allocation7 + $0x70] sm:$0xff]  ;;  %vm53_vm0 = vcmask 7168   ;;  %v310_v18 = vmov -inf  }
   0xd   :  { %80 = vmatpush.msra.mxu0 %v75_v0  ;;  %189 = vmatpush.msra.mxu1 %v75_v0  ;;  %v73_v2 = vld [vmem:[#allocation7 + $0x68] sm:$0xff]  ;;  %v72_v3 = vld [vmem:[#allocation7 + $0x60] sm:$0xff]  ;;  %v71_v4 = vld [vmem:[#allocation7 + $0x58] sm:$0xff]  ;;  %54 = vst.msk [vmem:[#allocation2] sm:$0xff] %vm53_vm0, %v310_v18  ;;  %v311_v24 = vmov 0   ;;  %v312_v25 = vmov 0.0  }
   0xe   :  { %v70_v5 = vld [vmem:[#allocation7 + $0x50] sm:$0xff]  ;;  %v69_v6 = vld [vmem:[#allocation7 + $0x48] sm:$0xff]  ;;  %v68_v7 = vld [vmem:[#allocation7 + $0x40] sm:$0xff]  ;;  %55 = vst.msk [vmem:[#allocation2 + $0x8] sm:$0xff] %vm53_vm0, %v310_v18  ;;  %213 = vset.pattern.permute.xlu1 %v311_v24  ;;  %214 = vset.pattern.permute.xlu0 %v311_v24  ;;  %s171_s30 = sshll.u32 %s379_s3, 4  ;;  %s172_s30 = int_to_ptr.hbm [resolvable:$true] %s171_s30 }
   0xf   :  { %81 = vmatpush.msra.mxu0 %v74_v1  ;;  %190 = vmatpush.msra.mxu1 %v74_v1  ;;  %v67_v8 = vld [vmem:[#allocation7 + $0x38] sm:$0xff]  ;;  %v66_v9 = vld [vmem:[#allocation7 + $0x30] sm:$0xff]  ;;  %v65_v10 = vld [vmem:[#allocation7 + $0x28] sm:$0xff]  ;;  %56 = vst.msk [vmem:[#allocation3] sm:$0xff] %vm53_vm0, %v312_v25 }
  0x10   :  { %v64_v11 = vld [vmem:[#allocation7 + $0x20] sm:$0xff]  ;;  %v63_v12 = vld [vmem:[#allocation7 + $0x18] sm:$0xff]  ;;  %v62_v13 = vld [vmem:[#allocation7 + $0x10] sm:$0xff]  ;;  %57 = vst.msk [vmem:[#allocation3 + $0x8] sm:$0xff] %vm53_vm0, %v312_v25 }
  0x11   :  { %82 = vmatpush.msra.mxu0 %v73_v2  ;;  %191 = vmatpush.msra.mxu1 %v73_v2  ;;  %v61_v14 = vld [vmem:[#allocation7 + $0x8] sm:$0xff]  ;;  %v60_v15 = vld [vmem:[#allocation7] sm:$0xff]  ;;  %v58_v16 = vld [vmem:[#allocation4] sm:$0xff] }
  0x12   :  { %v59_v17 = vld [vmem:[#allocation4 + $0x8] sm:$0xff]  ;;  %v215_v19 = vld [vmem:[%s378_s2] ss:$0 sm:$0xff]  ;;  %s313_s2 = smov [#allocation9]  }
  0x13   :  { %83 = vmatpush.msra.mxu0 %v72_v3  ;;  %192 = vmatpush.msra.mxu1 %v72_v3  ;;  %s169_s27 = sshll.u32 %s313_s2, 4  ;;  %s170_s27 = int_to_ptr.vmem [resolvable:$true] %s169_s27 }
  0x14   :  { %v105_v26 = vld [vmem:[#allocation2] sm:$0xff] }
  0x15   :  { %84 = vmatpush.msra.mxu0 %v71_v4  ;;  %193 = vmatpush.msra.mxu1 %v71_v4  ;;  %v106_v30 = vld [vmem:[#allocation2 + $0x8] sm:$0xff] }
  0x16   :  { %v119_v45 = vld [vmem:[#allocation3] sm:$0xff] }
  0x17   :  { %85 = vmatpush.msra.mxu0 %v70_v5  ;;  %194 = vmatpush.msra.mxu1 %v70_v5  ;;  %v120_v50 = vld [vmem:[#allocation3 + $0x8] sm:$0xff] }
  0x19   :  { %86 = vmatpush.msra.mxu0 %v69_v6  ;;  %195 = vmatpush.msra.mxu1 %v69_v6 }
  0x1b   :  { %87 = vmatpush.msra.mxu0 %v68_v7  ;;  %196 = vmatpush.msra.mxu1 %v68_v7 }
  0x1d   :  { %88 = vmatpush.msra.mxu0 %v67_v8  ;;  %197 = vmatpush.msra.mxu1 %v67_v8 }
  0x1f   :  { %89 = vmatpush.msra.mxu0 %v66_v9  ;;  %198 = vmatpush.msra.mxu1 %v66_v9 }
  0x21   :  { %90 = vmatpush.msra.mxu0 %v65_v10  ;;  %199 = vmatpush.msra.mxu1 %v65_v10 }
  0x23   :  { %91 = vmatpush.msra.mxu0 %v64_v11  ;;  %200 = vmatpush.msra.mxu1 %v64_v11 }
  0x25   :  { %92 = vmatpush.msra.mxu0 %v63_v12  ;;  %201 = vmatpush.msra.mxu1 %v63_v12 }
  0x27   :  { %93 = vmatpush.msra.mxu0 %v62_v13  ;;  %202 = vmatpush.msra.mxu1 %v62_v13 }
  0x29   :  { %94 = vmatpush.msra.mxu0 %v61_v14  ;;  %203 = vmatpush.msra.mxu1 %v61_v14 }
  0x2b   :  { %95 = vmatpush.msra.mxu0 %v60_v15  ;;  %204 = vmatpush.msra.mxu1 %v60_v15 }
  0x2c   :  { %96 = vmatmul.f32.vlgmr.msra.gmra.mxu0 %v58_v16  ;;  %99 = vmatmul.f32.vlgmr.msra.gmra.mxu1 %v59_v17 }
  0xa9   :  { %v97_v20 = vpop.f32.mrf.mxu0  ;;  %v100_v21 = vpop.f32.mrf.mxu1 }
  0xaa   :  { %v98_v22 = vadd.f32 %v215_v19, %v97_v20  ;;  %v101_v23 = vadd.f32 %v215_v19, %v100_v21 }
  0xac   :  { %103 = vst [vmem:[#allocation9] sm:$0xff] %v98_v22  ;;  %107 = vmax.xlane.f32.xlu0 %v98_v22 }
  0xad   :  { %104 = vst [vmem:[#allocation9 + $0x8] sm:$0xff] %v101_v23 }
  0xae   :  { %177 = dma.vmem_to_hbm [thread:$0]  %s170_s27, 256, %s172_s30, [#allocation6], %s307_s23, %s307_s23, %s308_s24  }
  0xb4   :  { %109 = vmax.xlane.f32.xlu0 %v101_v23 }
 0x11f   :  { %v108_v27 = vpop.xlane.xlu0 %107 }
 0x120   :  { %v111_v28 = vmax.f32 %v105_v26, %v108_v27 }
 0x122   :  { %v113_v29 = vsub.f32 %v105_v26, %v111_v28  ;;  %148 = vst.msk [vmem:[#allocation2] sm:$0xff] %vm53_vm0, %v111_v28  ;;  %125 = vperm.xlu1 %213, %v111_v28  }
 0x124   :  { %v115_v42 = vmul.f32 1.442695, %v113_v29 }
 0x127   :  { %v110_v31 = vpop.xlane.xlu0 %109 }
 0x128   :  { %v112_v32 = vmax.f32 %v106_v30, %v110_v31 }
 0x129   :  { %v153_v58 = vld [vmem:[#allocation2] sm:$0xff] }
 0x12a   :  { %v114_v33 = vsub.f32 %v106_v30, %v112_v32  ;;  %149 = vst.msk [vmem:[#allocation2 + $0x8] sm:$0xff] %vm53_vm0, %v112_v32  ;;  %130 = vperm.xlu1 %213, %v112_v32  }
 0x12c   :  { %v117_v43 = vmul.f32 1.442695, %v114_v33 }
 0x131   :  { %v154_v62 = vld [vmem:[#allocation2 + $0x8] sm:$0xff] }
 0x194   :  { %v126_v34 = vpop.permute.xlu1 %125 }
 0x195   :  { %v133_v35 = vsub.f32 %v98_v22, %v126_v34 }
 0x197   :  { %v135_v36 = vmul.f32 1.442695, %v133_v35 }
 0x199   :  { %216 = vpow2.f32 %v135_v36 }
 0x19c   :  { %v131_v37 = vpop.permute.xlu1 %130 }
 0x19d   :  { %v134_v38 = vsub.f32 %v101_v23, %v131_v37 }
 0x19f   :  { %v217_v39 = vpop.eup %216  ;;  %v137_v40 = vmul.f32 1.442695, %v134_v38 }
 0x1a0   :  { %139 = vadd.xlane.f32.xlu2 %v217_v39 }
 0x1a1   :  { %218 = vpow2.f32 %v137_v40 }
 0x1a2   :  { %220 = vpow2.f32 %v115_v42 }
 0x1a3   :  { %222 = vpow2.f32 %v117_v43 }
 0x1a7   :  { %v219_v41 = vpop.eup %218 }
 0x1a8   :  { %141 = vadd.xlane.f32.xlu2 %v219_v41  ;;  %v221_v44 = vpop.eup %220 }
 0x1a9   :  { %v121_v46 = vmul.f32 %v221_v44, %v119_v45  ;;  %v223_v49 = vpop.eup %222 }
 0x1aa   :  { %v122_v51 = vmul.f32 %v223_v49, %v120_v50 }
 0x213   :  { %v140_v47 = vpop.xlane.xlu2 %139 }
 0x214   :  { %v143_v48 = vadd.f32 %v140_v47, %v121_v46 }
 0x216   :  { %146 = vst.msk [vmem:[#allocation3] sm:$0xff] %vm53_vm0, %v143_v48 }
 0x21b   :  { %v142_v52 = vpop.xlane.xlu2 %141 }
 0x21c   :  { %v144_v53 = vadd.f32 %v142_v52, %v122_v51 }
 0x21d   :  { %v155_v54 = vld [vmem:[#allocation3] sm:$0xff] }
 0x21e   :  { %224 = vlog2.f32 %v155_v54  ;;  %147 = vst.msk [vmem:[#allocation3 + $0x8] sm:$0xff] %vm53_vm0, %v144_v53 }
 0x224   :  { %v225_v55 = vpop.eup %224 }
 0x225   :  { %v158_v56 = vmul.f32 0.6931472, %v225_v55  ;;  %v156_v57 = vld [vmem:[#allocation3 + $0x8] sm:$0xff] }
 0x226   :  { %226 = vlog2.f32 %v156_v57 }
 0x227   :  { %v161_v59 = vadd.f32 %v158_v56, %v153_v58 }
 0x229   :  { %163 = vst.msk [vmem:[%s380_s4] sm:$0xff] %vm53_vm0, %v161_v59 }
 0x22c   :  { %v227_v60 = vpop.eup %226 }
 0x22d   :  { %v160_v61 = vmul.f32 0.6931472, %v227_v60 }
 0x22f   :  { %v162_v63 = vadd.f32 %v160_v61, %v154_v62 }
 0x231   :  { %164 = vst.msk [vmem:[%s380_s4 + $0x8] sm:$0xff] %vm53_vm0, %v162_v63 }
 0x232   :  { %304 = dma.done.wait [#allocation6], 256  }
 0x233   :  { %305 = vsyncadd [#allocation6], 4294967040 }
 0x234   :  { %186 = vsyncpa [#allocation5], 1 }
 0x235   :  { %187 = vsyncpa [#allocation8], 1 }
 0x236   :  { %188 = vsyncpa [#allocation6], 1 }

</bundles_post_ra>
